<compile_context>
chip_gen: v7x
topology: tpu7x:2x2x1
jax: 0.10.0
libtpu: 0.0.40
codegen_flags: <defaults>
</compile_context>

<pallas_src>
import jax
import jax.numpy as jnp
from jax.experimental import pallas as pl
from jax.experimental.pallas import tpu as pltpu

OBS_N = 4
HIDDEN = 512
ACT_N = 2

MAX_TILE_B = 512      # per-step batch tile; (TILE_B,512) f32 intermediates stay small
OUT_PAD = 128         # lane-dense padded output width (>= ACT_N, multiple of 128)


def _round_up(n, m):
    return ((n + m - 1) // m) * m


def qnet_kernel(x_ref, w1_ref, b1_ref, w2_ref, b2_ref, w3_ref, b3_ref, o_ref):
    x = x_ref[...]                      # (TB, OBS_N) f32
    w1 = w1_ref[...]                    # (OBS_N, H) f32

    # fc1: K=4 contraction done on the VPU as broadcasted FMAs (skip the MXU).
    h = x[:, 0:1] * w1[0:1, :]
    for k in range(1, OBS_N):
        h = h + x[:, k:k + 1] * w1[k:k + 1, :]
    h = jnp.maximum(h + b1_ref[...], 0.0)                       # (TB, H) f32

    # fc2 + ReLU: bf16 MXU matmul, f32 accumulate, f32 epilogue.
    h = jnp.dot(h.astype(jnp.bfloat16), w2_ref[...],
                preferred_element_type=jnp.float32)
    h = jnp.maximum(h + b2_ref[...], 0.0)                       # (TB, H) f32

    # fc3 (no activation): padded to OUT_PAD lanes for an unmasked store.
    out = jnp.dot(h.astype(jnp.bfloat16), w3_ref[...],
                  preferred_element_type=jnp.float32)
    o_ref[...] = (out + b3_ref[...]).astype(o_ref.dtype)        # (TB, OUT_PAD)


def qnetwork_forward(x, params):
    """QNetwork.forward: relu(fc1) -> relu(fc2) -> fc3, fused in one kernel."""
    w1, b1, w2, b2, w3, b3 = params
    B = x.shape[0]

    tile_b = min(MAX_TILE_B, _round_up(B, 8))
    b_pad = _round_up(B, tile_b)
    if b_pad != B:
        x = jnp.pad(x, ((0, b_pad - B), (0, 0)))

    # Lane-dense fc3: zero-pad weight/bias columns to OUT_PAD.
    w3p = jnp.pad(w3, ((0, 0), (0, OUT_PAD - ACT_N)))
    b3p = jnp.pad(b3, ((0, 0), (0, OUT_PAD - ACT_N)))

    const = lambda a: pl.BlockSpec(a.shape, lambda i, _n=a.ndim: (0,) * _n)

    out = pl.pallas_call(
        qnet_kernel,
        out_shape=jax.ShapeDtypeStruct((b_pad, OUT_PAD), jnp.float32),
        grid=(b_pad // tile_b,),
        in_specs=[
            pl.BlockSpec((tile_b, OBS_N), lambda i: (i, 0)),   # x: tiled over batch
            const(w1), const(b1),                              # weights/biases: resident
            const(w2), const(b2),
            const(w3p), const(b3p),
        ],
        out_specs=pl.BlockSpec((tile_b, OUT_PAD), lambda i: (i, 0)),
        compiler_params=pltpu.CompilerParams(
            dimension_semantics=("parallel",),
            vmem_limit_bytes=32 * 1024 * 1024,
        ),
    )(x, w1, b1, w2, b2, w3p, b3p)

    return out[:B, :ACT_N]


def init_params(key):
    """Deterministic init mimicking torch.nn.Linear default U[-1/sqrt(fan_in), +].

    w2/w3 are stored in bf16 (dominant HBM traffic, native MXU rate); w1 and
    all biases stay f32 (tiny / used on the VPU path).
    """
    ks = jax.random.split(key, 6)

    def linear(kw, kb, fan_in, fan_out, w_dtype):
        bound = 1.0 / jnp.sqrt(float(fan_in))
        w = jax.random.uniform(kw, (fan_in, fan_out), jnp.float32, -bound, bound)
        b = jax.random.uniform(kb, (1, fan_out), jnp.float32, -bound, bound)
        return w.astype(w_dtype), b

    w1, b1 = linear(ks[0], ks[1], OBS_N, HIDDEN, jnp.float32)
    w2, b2 = linear(ks[2], ks[3], HIDDEN, HIDDEN, jnp.bfloat16)
    w3, b3 = linear(ks[4], ks[5], HIDDEN, ACT_N, jnp.bfloat16)
    return (w1, b1, w2, b2, w3, b3)


def reference_forward(x, params):
    """Pure-JAX reference (f32 math, same weight bits)."""
    w1, b1, w2, b2, w3, b3 = params
    h = jnp.maximum(x @ w1 + b1, 0.0)
    h = jnp.maximum(h @ w2.astype(jnp.float32) + b2, 0.0)
    return h @ w3.astype(jnp.float32) + b3


# TODO(synk): QNetwork.value() (alpha * logsumexp(Q/alpha)) is not part of
# forward(); it can be fused into the kernel epilogue later if needed.

if __name__ == "__main__":
    key = jax.random.PRNGKey(0)
    kp, kx = jax.random.split(key)
    params = init_params(kp)

    B = 8  # small batch
    x = jax.random.normal(kx, (B, OBS_N), jnp.float32)

    fwd = jax.jit(qnetwork_forward)
    out = jax.block_until_ready(fwd(x, params))

    ref = reference_forward(x, params)
    assert out.shape == (B, ACT_N)
    # bf16 activations/weights inside the kernel -> relaxed tolerance vs f32 ref.
    assert jnp.allclose(out, ref, atol=1e-2, rtol=1e-2), float(
        jnp.max(jnp.abs(out - ref)))

    print("KERNEL_OK")
</pallas_src>

<mosaic_0001>
module attributes {stable_mosaic.version = 11 : i64} {
  func.func @qnet_kernel(%arg0: i32, %arg1: memref<8x4xf32, #tpu.memory_space<vmem>>, %arg2: memref<4x512xf32, #tpu.memory_space<vmem>>, %arg3: memref<1x512xf32, #tpu.memory_space<vmem>>, %arg4: memref<512x512xbf16, #tpu.memory_space<vmem>>, %arg5: memref<1x512xf32, #tpu.memory_space<vmem>>, %arg6: memref<512x128xbf16, #tpu.memory_space<vmem>>, %arg7: memref<1x128xf32, #tpu.memory_space<vmem>>, %arg8: memref<8x128xf32, #tpu.memory_space<vmem>>) attributes {dimension_semantics = [#tpu.dimension_semantics<parallel>], iteration_bounds = array<i64: 1>, scalar_prefetch = 0 : i64, scratch_operands = 0 : i64, tpu.core_type = #tpu.core_type<tc>, window_params = [{transform_indices = @transform_0, window_bounds = array<i64: 8, 4>}, {pipeline_mode = #tpu.pipeline_mode<synchronous>, transform_indices = @transform_1, window_bounds = array<i64: 4, 512>}, {pipeline_mode = #tpu.pipeline_mode<synchronous>, transform_indices = @transform_2, window_bounds = array<i64: 1, 512>}, {pipeline_mode = #tpu.pipeline_mode<synchronous>, transform_indices = @transform_3, window_bounds = array<i64: 512, 512>}, {pipeline_mode = #tpu.pipeline_mode<synchronous>, transform_indices = @transform_4, window_bounds = array<i64: 1, 512>}, {pipeline_mode = #tpu.pipeline_mode<synchronous>, transform_indices = @transform_5, window_bounds = array<i64: 512, 128>}, {pipeline_mode = #tpu.pipeline_mode<synchronous>, transform_indices = @transform_6, window_bounds = array<i64: 1, 128>}, {transform_indices = @transform_7, window_bounds = array<i64: 8, 128>}]} {
    %c0 = arith.constant 0 : index
    %c0_0 = arith.constant 0 : index
    %0 = vector.load %arg1[%c0, %c0_0] : memref<8x4xf32, #tpu.memory_space<vmem>>, vector<8x4xf32>
    %c0_1 = arith.constant 0 : index
    %c0_2 = arith.constant 0 : index
    %1 = vector.load %arg2[%c0_1, %c0_2] : memref<4x512xf32, #tpu.memory_space<vmem>>, vector<4x512xf32>
    %2 = vector.extract_strided_slice %0 {offsets = [0, 0], sizes = [8, 1], strides = [1, 1]} : vector<8x4xf32> to vector<8x1xf32>
    %3 = vector.extract_strided_slice %1 {offsets = [0, 0], sizes = [1, 512], strides = [1, 1]} : vector<4x512xf32> to vector<1x512xf32>
    %4 = vector.broadcast %2 : vector<8x1xf32> to vector<8x512xf32>
    %5 = vector.broadcast %3 : vector<1x512xf32> to vector<8x512xf32>
    %6 = arith.mulf %4, %5 : vector<8x512xf32>
    %7 = vector.extract_strided_slice %0 {offsets = [0, 1], sizes = [8, 1], strides = [1, 1]} : vector<8x4xf32> to vector<8x1xf32>
    %8 = vector.extract_strided_slice %1 {offsets = [1, 0], sizes = [1, 512], strides = [1, 1]} : vector<4x512xf32> to vector<1x512xf32>
    %9 = vector.broadcast %7 : vector<8x1xf32> to vector<8x512xf32>
    %10 = vector.broadcast %8 : vector<1x512xf32> to vector<8x512xf32>
    %11 = arith.mulf %9, %10 : vector<8x512xf32>
    %12 = arith.addf %6, %11 : vector<8x512xf32>
    %13 = vector.extract_strided_slice %0 {offsets = [0, 2], sizes = [8, 1], strides = [1, 1]} : vector<8x4xf32> to vector<8x1xf32>
    %14 = vector.extract_strided_slice %1 {offsets = [2, 0], sizes = [1, 512], strides = [1, 1]} : vector<4x512xf32> to vector<1x512xf32>
    %15 = vector.broadcast %13 : vector<8x1xf32> to vector<8x512xf32>
    %16 = vector.broadcast %14 : vector<1x512xf32> to vector<8x512xf32>
    %17 = arith.mulf %15, %16 : vector<8x512xf32>
    %18 = arith.addf %12, %17 : vector<8x512xf32>
    %19 = vector.extract_strided_slice %0 {offsets = [0, 3], sizes = [8, 1], strides = [1, 1]} : vector<8x4xf32> to vector<8x1xf32>
    %20 = vector.extract_strided_slice %1 {offsets = [3, 0], sizes = [1, 512], strides = [1, 1]} : vector<4x512xf32> to vector<1x512xf32>
    %21 = vector.broadcast %19 : vector<8x1xf32> to vector<8x512xf32>
    %22 = vector.broadcast %20 : vector<1x512xf32> to vector<8x512xf32>
    %23 = arith.mulf %21, %22 : vector<8x512xf32>
    %24 = arith.addf %18, %23 : vector<8x512xf32>
    %c0_3 = arith.constant 0 : index
    %c0_4 = arith.constant 0 : index
    %25 = vector.load %arg3[%c0_3, %c0_4] : memref<1x512xf32, #tpu.memory_space<vmem>>, vector<1x512xf32>
    %26 = vector.broadcast %25 : vector<1x512xf32> to vector<8x512xf32>
    %27 = arith.addf %24, %26 : vector<8x512xf32>
    %cst = arith.constant 0.000000e+00 : f32
    %28 = vector.broadcast %cst : f32 to vector<8x512xf32>
    %29 = arith.maximumf %27, %28 : vector<8x512xf32>
    %30 = arith.truncf %29 : vector<8x512xf32> to vector<8x512xbf16>
    %c0_5 = arith.constant 0 : index
    %c0_6 = arith.constant 0 : index
    %31 = vector.load %arg4[%c0_5, %c0_6] : memref<512x512xbf16, #tpu.memory_space<vmem>>, vector<512x512xbf16>
    %cst_7 = arith.constant dense<0.000000e+00> : vector<8x512xf32>
    %32 = tpu.matmul %30, %31, %cst_7 {dimension_numbers = #tpu.dot_dimension_numbers<[1], [0], [0], [1], [0, 0, 1, 1], [], []>} : vector<8x512xbf16>, vector<512x512xbf16>, vector<8x512xf32> -> vector<8x512xf32>
    %c0_8 = arith.constant 0 : index
    %c0_9 = arith.constant 0 : index
    %33 = vector.load %arg5[%c0_8, %c0_9] : memref<1x512xf32, #tpu.memory_space<vmem>>, vector<1x512xf32>
    %34 = vector.broadcast %33 : vector<1x512xf32> to vector<8x512xf32>
    %35 = arith.addf %32, %34 : vector<8x512xf32>
    %cst_10 = arith.constant 0.000000e+00 : f32
    %36 = vector.broadcast %cst_10 : f32 to vector<8x512xf32>
    %37 = arith.maximumf %35, %36 : vector<8x512xf32>
    %38 = arith.truncf %37 : vector<8x512xf32> to vector<8x512xbf16>
    %c0_11 = arith.constant 0 : index
    %c0_12 = arith.constant 0 : index
    %39 = vector.load %arg6[%c0_11, %c0_12] : memref<512x128xbf16, #tpu.memory_space<vmem>>, vector<512x128xbf16>
    %cst_13 = arith.constant dense<0.000000e+00> : vector<8x128xf32>
    %40 = tpu.matmul %38, %39, %cst_13 {dimension_numbers = #tpu.dot_dimension_numbers<[1], [0], [0], [1], [0, 0, 1, 1], [], []>} : vector<8x512xbf16>, vector<512x128xbf16>, vector<8x128xf32> -> vector<8x128xf32>
    %c0_14 = arith.constant 0 : index
    %c0_15 = arith.constant 0 : index
    %41 = vector.load %arg7[%c0_14, %c0_15] : memref<1x128xf32, #tpu.memory_space<vmem>>, vector<1x128xf32>
    %42 = vector.broadcast %41 : vector<1x128xf32> to vector<8x128xf32>
    %43 = arith.addf %40, %42 : vector<8x128xf32>
    %c0_16 = arith.constant 0 : index
    %c0_17 = arith.constant 0 : index
    %44 = vector.load %arg8[%c0_16, %c0_17] : memref<8x128xf32, #tpu.memory_space<vmem>>, vector<8x128xf32>
    tpu.vector_store %arg8[%c0_16, %c0_17], %43 {strides = array<i32>} : memref<8x128xf32, #tpu.memory_space<vmem>>, vector<8x128xf32>,
    return
  }
  func.func @transform_0(%arg0: i32) -> (i32, i32) {
    %c0_i32 = arith.constant 0 : i32
    %c0_i32_0 = arith.constant 0 : i32
    return %arg0, %c0_i32 : i32, i32
  }
  func.func @transform_1(%arg0: i32) -> (i32, i32) {
    %c0_i32 = arith.constant 0 : i32
    %c0_i32_0 = arith.constant 0 : i32
    %c0_i32_1 = arith.constant 0 : i32
    return %c0_i32, %c0_i32_0 : i32, i32
  }
  func.func @transform_2(%arg0: i32) -> (i32, i32) {
    %c0_i32 = arith.constant 0 : i32
    %c0_i32_0 = arith.constant 0 : i32
    %c0_i32_1 = arith.constant 0 : i32
    return %c0_i32, %c0_i32_0 : i32, i32
  }
  func.func @transform_3(%arg0: i32) -> (i32, i32) {
    %c0_i32 = arith.constant 0 : i32
    %c0_i32_0 = arith.constant 0 : i32
    %c0_i32_1 = arith.constant 0 : i32
    return %c0_i32, %c0_i32_0 : i32, i32
  }
  func.func @transform_4(%arg0: i32) -> (i32, i32) {
    %c0_i32 = arith.constant 0 : i32
    %c0_i32_0 = arith.constant 0 : i32
    %c0_i32_1 = arith.constant 0 : i32
    return %c0_i32, %c0_i32_0 : i32, i32
  }
  func.func @transform_5(%arg0: i32) -> (i32, i32) {
    %c0_i32 = arith.constant 0 : i32
    %c0_i32_0 = arith.constant 0 : i32
    %c0_i32_1 = arith.constant 0 : i32
    return %c0_i32, %c0_i32_0 : i32, i32
  }
  func.func @transform_6(%arg0: i32) -> (i32, i32) {
    %c0_i32 = arith.constant 0 : i32
    %c0_i32_0 = arith.constant 0 : i32
    %c0_i32_1 = arith.constant 0 : i32
    return %c0_i32, %c0_i32_0 : i32, i32
  }
  func.func @transform_7(%arg0: i32) -> (i32, i32) {
    %c0_i32 = arith.constant 0 : i32
    %c0_i32_0 = arith.constant 0 : i32
    return %arg0, %c0_i32 : i32, i32
  }
}

</mosaic_0001>

<bundles_post_ra>
// kernel: qnetwork_forward.1
= control target key start
LH: loop header
LB: loop body
LE: loop exit
PB: predicated region body
PF: predicated region fallthrough
CT: control target
= control target key end

     0   :  { %12 = vsyncpa [#allocation3], 0  ;;  %s2057_s24 = smov [#allocation2]   ;;  %s2276_s0 = inlined_call_operand.vmem [shape: f32[8,4], index: 0, kind: input, shape index: {}]   ;;  %s2277_s1 = inlined_call_operand.vmem [shape: f32[4,512], index: 1, kind: input, shape index: {}]   ;;  %s2278_s2 = inlined_call_operand.vmem [shape: f32[1,512], index: 2, kind: input, shape index: {}]   ;;  %s2279_s3 = inlined_call_operand.hbm [shape: bf16[512,512], index: 3, kind: input, shape index: {}]   ;;  %s2280_s4 = inlined_call_operand.vmem [shape: f32[1,512], index: 4, kind: input, shape index: {}]   ;;  %s2281_s5 = inlined_call_operand.vmem [shape: bf16[512,128], index: 5, kind: input, shape index: {}]   ;;  %s2282_s6 = inlined_call_operand.vmem [shape: f32[1,128], index: 6, kind: input, shape index: {}]   ;;  %s2283_s7 = inlined_call_operand.vmem [shape: f32[8,128], index: 7, kind: output, shape index: {}]  }
   0x1   :  { %s24_s25 = sshll.u32 %s2057_s24, 4  ;;  %s2033_s28 = scalar_lea.hbm %s2279_s3, 16384  ;;  %s25_s25 = int_to_ptr.vmem [resolvable:$true] %s24_s25 }
   0x2   :  { %p2034_p0 = scmp.ne.s32.totalorder %s2279_s3, %s2033_s28  ;;  %p2037_p1 = scmp.lt.u32.totalorder %s2033_s28, %s2279_s3 }
   0x4   :  { %p2039_p2 = pnand %p2037_p1, %p2034_p0 }
   0x6   :  { %2042 = shalt.err (!%p2039_p2)
}
   0x7   :  { %s2043_s10 = scalar_lea.vmem %s25_s25, 16384  ;;  %p2048_p4 = scmp.lt.s32.totalorder %s25_s25, %s25_s25 }
   0x8   :  { %p2044_p3 = scmp.ne.s32.totalorder %s25_s25, %s2043_s10  ;;  %p2049_p5 = scmp.lt.s32.totalorder %s2043_s10, %s2043_s10 }
   0xa   :  { %p2050_p6 = por %p2049_p5, %p2048_p4 }
   0xc   :  { %p2051_p7 = pnand %p2050_p6, %p2044_p3 }
   0xe   :  { %2054 = shalt.err (!%p2051_p7)
}
   0xf   :  { %s2058_s11 = smov 256   ;;  %s2059_s12 = smov 16  }
  0x10   :  { %30 = dma.hbm_to_vmem [thread:$0]  %s2279_s3, 16384, %s25_s25, [#allocation3], %s2058_s11, %s2058_s11, %s2059_s12  }
  0x11   :  { %2055 = dma.done.wait [#allocation3], 16384  }
  0x12   :  { %2056 = vsyncadd [#allocation3], 4294950912  ;;  %v2060_v0 = vmov 0   ;;  %v2061_v1 = vmov 2   ;;  %v41_v2 = vld [vmem:[%s2276_s0] sm:$0xff]  ;;  %v2062_v9 = vmov 1  }
  0x13   :  { %1804 = vset.pattern.permute.xlu0 %v2060_v0  ;;  %1806 = vset.pattern.permute.xlu1 %v2061_v1  ;;  %v1809_v3 = vld [vmem:[#allocation2 + $0x4] ss:$16 sps:$4 sm:$0xff]   ;;  %v1811_v4 = vld [vmem:[#allocation2 + $0xc] ss:$16 sps:$4 sm:$0xff]   ;;  %v1813_v5 = vld [vmem:[#allocation2] ss:$16 sps:$4 sm:$0xff]  }
  0x14   :  { %46 = vperm.xlu0 %1804, %v41_v2   ;;  %140 = vperm.xlu1 %1806, %v41_v2   ;;  %v1814_v6 = vld [vmem:[#allocation2 + $0x8] ss:$16 sps:$4 sm:$0xff]   ;;  %v1815_v7 = vld [vmem:[#allocation2 + $0x24] ss:$16 sps:$4 sm:$0xff]   ;;  %v1817_v8 = vld [vmem:[#allocation2 + $0x2c] ss:$16 sps:$4 sm:$0xff]  }
  0x15   :  { %1059 = vmatprep.subr.bf16.mxu0 %v1809_v3  ;;  %1141 = vmatprep.subr.bf16.mxu1 %v1811_v4  ;;  %v2063_v10 = vmov 3   ;;  %v1819_v11 = vld [vmem:[#allocation2 + $0x20] ss:$16 sps:$4 sm:$0xff]   ;;  %v1821_v12 = vld [vmem:[#allocation2 + $0x44] ss:$16 sps:$4 sm:$0xff]  }
  0x16   :  { %1060 = vmatpush1.bf16.msra.mxu0 %v1813_v5  ;;  %1142 = vmatpush1.bf16.msra.mxu1 %v1814_v6  ;;  %v1820_v13 = vld [vmem:[#allocation2 + $0x28] ss:$16 sps:$4 sm:$0xff]   ;;  %v1823_v14 = vld [vmem:[#allocation2 + $0x4c] ss:$16 sps:$4 sm:$0xff]   ;;  %v1825_v15 = vld [vmem:[#allocation2 + $0x40] ss:$16 sps:$4 sm:$0xff]  }
  0x17   :  { %1061 = vmatprep.subr.bf16.mxu0 %v1815_v7  ;;  %1143 = vmatprep.subr.bf16.mxu1 %v1817_v8  ;;  %v1827_v16 = vld [vmem:[#allocation2 + $0x64] ss:$16 sps:$4 sm:$0xff]   ;;  %v1826_v17 = vld [vmem:[#allocation2 + $0x48] ss:$16 sps:$4 sm:$0xff]   ;;  %v1829_v18 = vld [vmem:[#allocation2 + $0x6c] ss:$16 sps:$4 sm:$0xff]   ;;  %v51_v7 = vlaneseq }
  0x18   :  { %1805 = vset.pattern.permute.xlu0 %v2062_v9  ;;  %1807 = vset.pattern.permute.xlu1 %v2063_v10  ;;  %v1831_v19 = vld [vmem:[#allocation2 + $0x60] ss:$16 sps:$4 sm:$0xff]   ;;  %v1833_v20 = vld [vmem:[#allocation2 + $0x84] ss:$16 sps:$4 sm:$0xff]   ;;  %v1832_v21 = vld [vmem:[#allocation2 + $0x68] ss:$16 sps:$4 sm:$0xff]  }
  0x19   :  { %92 = vperm.xlu0 %1805, %v41_v2   ;;  %188 = vperm.xlu1 %1807, %v41_v2   ;;  %v1835_v22 = vld [vmem:[#allocation2 + $0x8c] ss:$16 sps:$4 sm:$0xff]   ;;  %v1837_v23 = vld [vmem:[#allocation2 + $0x80] ss:$16 sps:$4 sm:$0xff]   ;;  %v1839_v24 = vld [vmem:[#allocation2 + $0xa4] ss:$16 sps:$4 sm:$0xff]  }
  0x1a   :  { %1062 = vmatpush1.bf16.msra.mxu0 %v1819_v11  ;;  %1144 = vmatpush1.bf16.msra.mxu1 %v1820_v13  ;;  %v1838_v25 = vld [vmem:[#allocation2 + $0x88] ss:$16 sps:$4 sm:$0xff]   ;;  %v1841_v26 = vld [vmem:[#allocation2 + $0xac] ss:$16 sps:$4 sm:$0xff]   ;;  %v1843_v27 = vld [vmem:[#allocation2 + $0xa0] ss:$16 sps:$4 sm:$0xff]  }
  0x1b   :  { %1063 = vmatprep.subr.bf16.mxu0 %v1821_v12  ;;  %1145 = vmatprep.subr.bf16.mxu1 %v1823_v14  ;;  %v1845_v28 = vld [vmem:[#allocation2 + $0xc4] ss:$16 sps:$4 sm:$0xff]   ;;  %v1844_v29 = vld [vmem:[#allocation2 + $0xa8] ss:$16 sps:$4 sm:$0xff]   ;;  %v1847_v30 = vld [vmem:[#allocation2 + $0xcc] ss:$16 sps:$4 sm:$0xff]  }
  0x1c   :  { %v1849_v31 = vld [vmem:[#allocation2 + $0xc0] ss:$16 sps:$4 sm:$0xff]   ;;  %v1851_v32 = vld [vmem:[#allocation2 + $0xe4] ss:$16 sps:$4 sm:$0xff]   ;;  %v1850_v33 = vld [vmem:[#allocation2 + $0xc8] ss:$16 sps:$4 sm:$0xff]  }
  0x1d   :  { %1808 = vset.pattern.permute.xlu0 %v2063_v10  ;;  %v1853_v34 = vld [vmem:[#allocation2 + $0xec] ss:$16 sps:$4 sm:$0xff]   ;;  %v1855_v35 = vld [vmem:[#allocation2 + $0xe0] ss:$16 sps:$4 sm:$0xff]   ;;  %v1857_v36 = vld [vmem:[#allocation2 + $0x104] ss:$16 sps:$4 sm:$0xff]  }
  0x1e   :  { %1064 = vmatpush1.bf16.msra.mxu0 %v1825_v15  ;;  %1146 = vmatpush1.bf16.msra.mxu1 %v1826_v17  ;;  %v1856_v37 = vld [vmem:[#allocation2 + $0xe8] ss:$16 sps:$4 sm:$0xff]   ;;  %v1859_v38 = vld [vmem:[#allocation2 + $0x10c] ss:$16 sps:$4 sm:$0xff]   ;;  %v1861_v39 = vld [vmem:[#allocation2 + $0x100] ss:$16 sps:$4 sm:$0xff]  }
  0x1f   :  { %1065 = vmatprep.subr.bf16.mxu0 %v1827_v16  ;;  %1147 = vmatprep.subr.bf16.mxu1 %v1829_v18  ;;  %v1863_v40 = vld [vmem:[#allocation2 + $0x124] ss:$16 sps:$4 sm:$0xff]   ;;  %v1862_v41 = vld [vmem:[#allocation2 + $0x108] ss:$16 sps:$4 sm:$0xff]   ;;  %v1865_v42 = vld [vmem:[#allocation2 + $0x12c] ss:$16 sps:$4 sm:$0xff]  }
  0x20   :  { %v1867_v43 = vld [vmem:[#allocation2 + $0x120] ss:$16 sps:$4 sm:$0xff]   ;;  %v1869_v44 = vld [vmem:[#allocation2 + $0x144] ss:$16 sps:$4 sm:$0xff]   ;;  %v1868_v45 = vld [vmem:[#allocation2 + $0x128] ss:$16 sps:$4 sm:$0xff]  }
  0x21   :  { %v1871_v46 = vld [vmem:[#allocation2 + $0x14c] ss:$16 sps:$4 sm:$0xff]   ;;  %v1873_v47 = vld [vmem:[#allocation2 + $0x140] ss:$16 sps:$4 sm:$0xff]   ;;  %v1875_v48 = vld [vmem:[#allocation2 + $0x164] ss:$16 sps:$4 sm:$0xff]  }
  0x22   :  { %1066 = vmatpush1.bf16.msra.mxu0 %v1831_v19  ;;  %1148 = vmatpush1.bf16.msra.mxu1 %v1832_v21  ;;  %v1874_v49 = vld [vmem:[#allocation2 + $0x148] ss:$16 sps:$4 sm:$0xff]   ;;  %v1877_v50 = vld [vmem:[#allocation2 + $0x16c] ss:$16 sps:$4 sm:$0xff]   ;;  %v1879_v51 = vld [vmem:[#allocation2 + $0x160] ss:$16 sps:$4 sm:$0xff]  }
  0x23   :  { %1067 = vmatprep.subr.bf16.mxu0 %v1833_v20  ;;  %1149 = vmatprep.subr.bf16.mxu1 %v1835_v22  ;;  %v1881_v52 = vld [vmem:[#allocation2 + $0x184] ss:$16 sps:$4 sm:$0xff]   ;;  %v1880_v53 = vld [vmem:[#allocation2 + $0x168] ss:$16 sps:$4 sm:$0xff]   ;;  %v1883_v54 = vld [vmem:[#allocation2 + $0x18c] ss:$16 sps:$4 sm:$0xff]  }
  0x24   :  { %v1885_v55 = vld [vmem:[#allocation2 + $0x180] ss:$16 sps:$4 sm:$0xff]   ;;  %v1887_v56 = vld [vmem:[#allocation2 + $0x1a4] ss:$16 sps:$4 sm:$0xff]   ;;  %v1886_v57 = vld [vmem:[#allocation2 + $0x188] ss:$16 sps:$4 sm:$0xff]  }
  0x25   :  { %v1889_v58 = vld [vmem:[#allocation2 + $0x1ac] ss:$16 sps:$4 sm:$0xff]   ;;  %v1891_v59 = vld [vmem:[#allocation2 + $0x1a0] ss:$16 sps:$4 sm:$0xff]   ;;  %v1893_v60 = vld [vmem:[#allocation2 + $0x1c4] ss:$16 sps:$4 sm:$0xff]  }
  0x26   :  { %1068 = vmatpush1.bf16.msra.mxu0 %v1837_v23  ;;  %1150 = vmatpush1.bf16.msra.mxu1 %v1838_v25  ;;  %v1892_v61 = vld [vmem:[#allocation2 + $0x1a8] ss:$16 sps:$4 sm:$0xff]   ;;  %v1895_v62 = vld [vmem:[#allocation2 + $0x1cc] ss:$16 sps:$4 sm:$0xff]   ;;  %v1897_v63 = vld [vmem:[#allocation2 + $0x1c0] ss:$16 sps:$4 sm:$0xff]  }
  0x27   :  { %1069 = vmatprep.subr.bf16.mxu0 %v1839_v24  ;;  %1151 = vmatprep.subr.bf16.mxu1 %v1841_v26  ;;  %v1899_v0 = vld [vmem:[#allocation2 + $0x1e4] ss:$16 sps:$4 sm:$0xff]   ;;  %v1898_v1 = vld [vmem:[#allocation2 + $0x1c8] ss:$16 sps:$4 sm:$0xff]   ;;  %v1901_v2 = vld [vmem:[#allocation2 + $0x1ec] ss:$16 sps:$4 sm:$0xff]  }
  0x28   :  { %v1903_v3 = vld [vmem:[#allocation2 + $0x1e0] ss:$16 sps:$4 sm:$0xff]   ;;  %v1907_v4 = vld [vmem:[#allocation2 + $0x204] ss:$16 sps:$4 sm:$0xff]   ;;  %v1904_v5 = vld [vmem:[#allocation2 + $0x1e8] ss:$16 sps:$4 sm:$0xff]  }
  0x29   :  { %v1910_v6 = vld [vmem:[#allocation2 + $0x20c] ss:$16 sps:$4 sm:$0xff]   ;;  %v52_v8 = vshrl.u32 %v51_v7, 7  ;;  %v42_v12 = vld [vmem:[%s2277_s1] sm:$0xff] }
  0x2a   :  { %1070 = vmatpush1.bf16.msra.mxu0 %v1843_v27  ;;  %1152 = vmatpush1.bf16.msra.mxu1 %v1844_v29  ;;  %v43_v13 = vld [vmem:[%s2277_s1 + $0x8] sm:$0xff] }
  0x2b   :  { %1071 = vmatprep.subr.bf16.mxu0 %v1845_v28  ;;  %1153 = vmatprep.subr.bf16.mxu1 %v1847_v30  ;;  %v2119_v9 = vsub.s32 2, %v52_v8  ;;  %v2121_v10 = vsub.s32 0, %v52_v8  ;;  %v57_v11 = vsub.s32 4, %v52_v8  ;;  %v149_v14 = vsub.s32 6, %v52_v8 }
  0x2c   :  { %v2129_v15 = vsub.s32 1, %v52_v8  ;;  %v101_v17 = vsub.s32 5, %v52_v8  ;;  %v2132_v18 = vsub.s32 3, %v52_v8  ;;  %v197_v19 = vsub.s32 7, %v52_v8 }
  0x2d   :  { %v154_v16 = vrot.slane %v43_v13, %v2119_v9  ;;  %v54_v20 = vrot.slane %v42_v12, %v2121_v10  ;;  %v58_v21 = vrot.slane %v42_v12, %v57_v11  ;;  %v62_v22 = vrot.slane %v43_v13, %v2121_v10 }
  0x2e   :  { %1072 = vmatpush1.bf16.msra.mxu0 %v1849_v31  ;;  %1154 = vmatpush1.bf16.msra.mxu1 %v1850_v33  ;;  %v146_v23 = vrot.slane %v42_v12, %v2119_v9  ;;  %v66_v24 = vrot.slane %v43_v13, %v57_v11  ;;  %v150_v25 = vrot.slane %v42_v12, %v149_v14 }
  0x2f   :  { %1073 = vmatprep.subr.bf16.mxu0 %v1851_v32  ;;  %1155 = vmatprep.subr.bf16.mxu1 %v1853_v34  ;;  %v158_v26 = vrot.slane %v43_v13, %v149_v14  ;;  %v98_v27 = vrot.slane %v42_v12, %v2129_v15  ;;  %v174_v28 = vrot.slane %v154_v16, %v2119_v9 }
  0x30   :  { %v102_v29 = vrot.slane %v42_v12, %v101_v17  ;;  %v106_v30 = vrot.slane %v43_v13, %v2129_v15  ;;  %v110_v31 = vrot.slane %v43_v13, %v101_v17  ;;  %v194_v32 = vrot.slane %v42_v12, %v2132_v18 }
  0x31   :  { %v198_v33 = vrot.slane %v42_v12, %v197_v19  ;;  %v202_v34 = vrot.slane %v43_v13, %v2132_v18 }
  0x32   :  { %1074 = vmatpush1.bf16.msra.mxu0 %v1855_v35  ;;  %1156 = vmatpush1.bf16.msra.mxu1 %v1856_v37  ;;  %v206_v35 = vrot.slane %v43_v13, %v197_v19  ;;  %v78_v37 = vrot.slane %v58_v21, %v2121_v10 }
  0x33   :  { %1075 = vmatprep.subr.bf16.mxu0 %v1857_v36  ;;  %1157 = vmatprep.subr.bf16.mxu1 %v1859_v38  ;;  %v74_v36 = vrot.slane %v54_v20, %v2121_v10  ;;  %v82_v38 = vrot.slane %v62_v22, %v2121_v10 }
  0x36   :  { %1076 = vmatpush1.bf16.msra.mxu0 %v1861_v39  ;;  %1158 = vmatpush1.bf16.msra.mxu1 %v1862_v41 }
  0x37   :  { %1077 = vmatprep.subr.bf16.mxu0 %v1863_v40  ;;  %1159 = vmatprep.subr.bf16.mxu1 %v1865_v42  ;;  %v166_v40 = vrot.slane %v146_v23, %v2119_v9  ;;  %v86_v42 = vrot.slane %v66_v24, %v2121_v10 }
  0x3a   :  { %1078 = vmatpush1.bf16.msra.mxu0 %v1867_v43  ;;  %1160 = vmatpush1.bf16.msra.mxu1 %v1868_v45  ;;  %v170_v43 = vrot.slane %v150_v25, %v2119_v9  ;;  %v118_v45 = vrot.slane %v98_v27, %v2129_v15 }
  0x3b   :  { %1079 = vmatprep.subr.bf16.mxu0 %v1869_v44  ;;  %1161 = vmatprep.subr.bf16.mxu1 %v1871_v46  ;;  %v178_v44 = vrot.slane %v158_v26, %v2119_v9 }
  0x3e   :  { %1080 = vmatpush1.bf16.msra.mxu0 %v1873_v47  ;;  %1162 = vmatpush1.bf16.msra.mxu1 %v1874_v49  ;;  %v122_v47 = vrot.slane %v102_v29, %v2129_v15  ;;  %v130_v49 = vrot.slane %v110_v31, %v2129_v15 }
  0x3f   :  { %1081 = vmatprep.subr.bf16.mxu0 %v1875_v48  ;;  %1163 = vmatprep.subr.bf16.mxu1 %v1877_v50  ;;  %v126_v48 = vrot.slane %v106_v30, %v2129_v15  ;;  %v214_v50 = vrot.slane %v194_v32, %v2132_v18 }
  0x42   :  { %1082 = vmatpush1.bf16.msra.mxu0 %v1879_v51  ;;  %1164 = vmatpush1.bf16.msra.mxu1 %v1880_v53  ;;  %v218_v51 = vrot.slane %v198_v33, %v2132_v18  ;;  %v226_v53 = vrot.slane %v206_v35, %v2132_v18 }
  0x43   :  { %1083 = vmatprep.subr.bf16.mxu0 %v1881_v52  ;;  %1165 = vmatprep.subr.bf16.mxu1 %v1883_v54  ;;  %v222_v52 = vrot.slane %v202_v34, %v2132_v18 }
  0x46   :  { %1084 = vmatpush1.bf16.msra.mxu0 %v1885_v55  ;;  %1166 = vmatpush1.bf16.msra.mxu1 %v1886_v57 }
  0x47   :  { %1085 = vmatprep.subr.bf16.mxu0 %v1887_v56  ;;  %1167 = vmatprep.subr.bf16.mxu1 %v1889_v58 }
  0x4a   :  { %1086 = vmatpush1.bf16.msra.mxu0 %v1891_v59  ;;  %1168 = vmatpush1.bf16.msra.mxu1 %v1892_v61 }
  0x4b   :  { %1087 = vmatprep.subr.bf16.mxu0 %v1893_v60  ;;  %1169 = vmatprep.subr.bf16.mxu1 %v1895_v62 }
  0x4e   :  { %1088 = vmatpush1.bf16.msra.mxu0 %v1897_v63  ;;  %1170 = vmatpush1.bf16.msra.mxu1 %v1898_v1 }
  0x4f   :  { %1089 = vmatprep.subr.bf16.mxu0 %v1899_v0  ;;  %1171 = vmatprep.subr.bf16.mxu1 %v1901_v2 }
  0x52   :  { %1090 = vmatpush1.bf16.msra.mxu0 %v1903_v3  ;;  %1172 = vmatpush1.bf16.msra.mxu1 %v1904_v5  ;;  %v235_v3 = vld [vmem:[%s2278_s2] sm:$0xf] }
  0x53   :  { %1100 = vmatprep.subr.bf16.mxu0 %v1907_v4  ;;  %1182 = vmatprep.subr.bf16.mxu1 %v1910_v6  ;;  %v248_v14 = vrot.slane %v235_v3, %v2119_v9  ;;  %v244_v16 = vrot.slane %v235_v3, %v2129_v15  ;;  %v240_v17 = vrot.slane %v235_v3, %v2121_v10 }
  0x54   :  { %v252_v19 = vrot.slane %v235_v3, %v2132_v18  ;;  %v1950_v3 = vld [vmem:[#allocation2 + $0x2e8] ss:$16 sps:$4 sm:$0xff]  }
  0x93   :  { %v47_v39 = vpop.permute.xlu0 %46  ;;  %v141_v41 = vpop.permute.xlu1 %140 }
  0x94   :  { %v181_v46 = vmul.f32 %v174_v28, %v141_v41  ;;  %v87_v54 = vmul.f32 %v74_v36, %v47_v39  ;;  %v88_v55 = vmul.f32 %v78_v37, %v47_v39  ;;  %v89_v56 = vmul.f32 %v82_v38, %v47_v39  ;;  %v1905_v36 = vld [vmem:[#allocation2 + $0x200] ss:$16 sps:$4 sm:$0xff]   ;;  %v1908_v37 = vld [vmem:[#allocation2 + $0x208] ss:$16 sps:$4 sm:$0xff]  }
  0x95   :  { %v90_v57 = vmul.f32 %v86_v42, %v47_v39  ;;  %v179_v58 = vmul.f32 %v166_v40, %v141_v41  ;;  %v180_v59 = vmul.f32 %v170_v43, %v141_v41  ;;  %v182_v60 = vmul.f32 %v178_v44, %v141_v41  ;;  %v1913_v39 = vld [vmem:[#allocation2 + $0x224] ss:$16 sps:$4 sm:$0xff]   ;;  %v1916_v40 = vld [vmem:[#allocation2 + $0x22c] ss:$16 sps:$4 sm:$0xff]   ;;  %v1911_v42 = vld [vmem:[#allocation2 + $0x220] ss:$16 sps:$4 sm:$0xff]  }
  0x96   :  { %v1914_v43 = vld [vmem:[#allocation2 + $0x228] ss:$16 sps:$4 sm:$0xff]   ;;  %v1919_v44 = vld [vmem:[#allocation2 + $0x244] ss:$16 sps:$4 sm:$0xff]  }
  0x98   :  { %v93_v61 = vpop.permute.xlu0 %92  ;;  %v189_v62 = vpop.permute.xlu1 %188 }
  0x99   :  { %v131_v63 = vmul.f32 %v118_v45, %v93_v61  ;;  %v132_v0 = vmul.f32 %v122_v47, %v93_v61  ;;  %v133_v1 = vmul.f32 %v126_v48, %v93_v61  ;;  %v134_v2 = vmul.f32 %v130_v49, %v93_v61  ;;  %v1922_v45 = vld [vmem:[#allocation2 + $0x24c] ss:$16 sps:$4 sm:$0xff]   ;;  %v1920_v47 = vld [vmem:[#allocation2 + $0x248] ss:$16 sps:$4 sm:$0xff]   ;;  %v1925_v48 = vld [vmem:[#allocation2 + $0x264] ss:$16 sps:$4 sm:$0xff]  }
  0x9a   :  { %v227_v4 = vmul.f32 %v214_v50, %v189_v62  ;;  %v228_v5 = vmul.f32 %v218_v51, %v189_v62  ;;  %v229_v6 = vmul.f32 %v222_v52, %v189_v62  ;;  %v230_v7 = vmul.f32 %v226_v53, %v189_v62  ;;  %v1928_v49 = vld [vmem:[#allocation2 + $0x26c] ss:$16 sps:$4 sm:$0xff]   ;;  %v1923_v50 = vld [vmem:[#allocation2 + $0x260] ss:$16 sps:$4 sm:$0xff]   ;;  %v1926_v51 = vld [vmem:[#allocation2 + $0x268] ss:$16 sps:$4 sm:$0xff]  }
  0x9b   :  { %v135_v8 = vadd.f32 %v131_v63, %v87_v54  ;;  %v136_v11 = vadd.f32 %v132_v0, %v88_v55  ;;  %v137_v12 = vadd.f32 %v133_v1, %v89_v56  ;;  %v138_v13 = vadd.f32 %v134_v2, %v90_v57  ;;  %v1931_v52 = vld [vmem:[#allocation2 + $0x284] ss:$16 sps:$4 sm:$0xff]   ;;  %v1934_v53 = vld [vmem:[#allocation2 + $0x28c] ss:$16 sps:$4 sm:$0xff]   ;;  %v1929_v54 = vld [vmem:[#allocation2 + $0x280] ss:$16 sps:$4 sm:$0xff]  }
  0x9c   :  { %v1932_v55 = vld [vmem:[#allocation2 + $0x288] ss:$16 sps:$4 sm:$0xff]   ;;  %v1937_v56 = vld [vmem:[#allocation2 + $0x2a4] ss:$16 sps:$4 sm:$0xff]   ;;  %v1940_v57 = vld [vmem:[#allocation2 + $0x2ac] ss:$16 sps:$4 sm:$0xff]  }
  0x9d   :  { %v183_v20 = vadd.f32 %v179_v58, %v135_v8  ;;  %v185_v21 = vadd.f32 %v181_v46, %v137_v12  ;;  %v186_v22 = vadd.f32 %v182_v60, %v138_v13  ;;  %v184_v23 = vadd.f32 %v180_v59, %v136_v11  ;;  %v1917_v46 = vld [vmem:[#allocation2 + $0x240] ss:$16 sps:$4 sm:$0xff]   ;;  %v1938_v59 = vld [vmem:[#allocation2 + $0x2a8] ss:$16 sps:$4 sm:$0xff]   ;;  %v1943_v60 = vld [vmem:[#allocation2 + $0x2c4] ss:$16 sps:$4 sm:$0xff]  }
  0x9e   :  { %v1935_v58 = vld [vmem:[#allocation2 + $0x2a0] ss:$16 sps:$4 sm:$0xff]   ;;  %v1946_v61 = vld [vmem:[#allocation2 + $0x2cc] ss:$16 sps:$4 sm:$0xff]   ;;  %v1944_v63 = vld [vmem:[#allocation2 + $0x2c8] ss:$16 sps:$4 sm:$0xff]  }
  0x9f   :  { %v231_v24 = vadd.f32 %v227_v4, %v183_v20  ;;  %v233_v25 = vadd.f32 %v229_v6, %v185_v21  ;;  %v234_v26 = vadd.f32 %v230_v7, %v186_v22  ;;  %v232_v27 = vadd.f32 %v228_v5, %v184_v23  ;;  %v1941_v62 = vld [vmem:[#allocation2 + $0x2c0] ss:$16 sps:$4 sm:$0xff]   ;;  %v1949_v0 = vld [vmem:[#allocation2 + $0x2e4] ss:$16 sps:$4 sm:$0xff]   ;;  %v1952_v1 = vld [vmem:[#allocation2 + $0x2ec] ss:$16 sps:$4 sm:$0xff]  }
  0xa0   :  { %v1947_v2 = vld [vmem:[#allocation2 + $0x2e0] ss:$16 sps:$4 sm:$0xff]   ;;  %v1955_v4 = vld [vmem:[#allocation2 + $0x304] ss:$16 sps:$4 sm:$0xff]   ;;  %v1958_v5 = vld [vmem:[#allocation2 + $0x30c] ss:$16 sps:$4 sm:$0xff]  }
  0xa1   :  { %v2164_v28 = vadd.f32 %v248_v14, %v233_v25  ;;  %v258_v29 = vadd.f32 %v244_v16, %v232_v27  ;;  %v257_v30 = vadd.f32 %v240_v17, %v231_v24  ;;  %v260_v31 = vadd.f32 %v252_v19, %v234_v26  ;;  %v1953_v6 = vld [vmem:[#allocation2 + $0x300] ss:$16 sps:$4 sm:$0xff]   ;;  %v1956_v7 = vld [vmem:[#allocation2 + $0x308] ss:$16 sps:$4 sm:$0xff]   ;;  %v1961_v8 = vld [vmem:[#allocation2 + $0x324] ss:$16 sps:$4 sm:$0xff]  }
  0xa2   :  { %v1964_v11 = vld [vmem:[#allocation2 + $0x32c] ss:$16 sps:$4 sm:$0xff]   ;;  %v1959_v12 = vld [vmem:[#allocation2 + $0x320] ss:$16 sps:$4 sm:$0xff]   ;;  %v1962_v13 = vld [vmem:[#allocation2 + $0x328] ss:$16 sps:$4 sm:$0xff]  }
  0xa3   :  { %v262_v32 = vmax.f32 %v258_v29, 0.0  ;;  %v261_v33 = vmax.f32 %v257_v30, 0.0  ;;  %v264_v34 = vmax.f32 %v260_v31, 0.0  ;;  %v1967_v14 = vld [vmem:[#allocation2 + $0x344] ss:$16 sps:$4 sm:$0xff]  }
  0xa4   :  { %v1970_v16 = vld [vmem:[#allocation2 + $0x34c] ss:$16 sps:$4 sm:$0xff]   ;;  %v1965_v17 = vld [vmem:[#allocation2 + $0x340] ss:$16 sps:$4 sm:$0xff]   ;;  %v1968_v19 = vld [vmem:[#allocation2 + $0x348] ss:$16 sps:$4 sm:$0xff]  }
  0xa5   :  { %v266_v35 = vpack.c.bf16 %v262_v32, %v262_v32  ;;  %v265_v38 = vpack.c.bf16 %v261_v33, %v261_v33  ;;  %v268_v41 = vpack.c.bf16 %v264_v34, %v264_v34  ;;  %v1973_v20 = vld [vmem:[#allocation2 + $0x364] ss:$16 sps:$4 sm:$0xff]   ;;  %v1976_v21 = vld [vmem:[#allocation2 + $0x36c] ss:$16 sps:$4 sm:$0xff]   ;;  %v1971_v22 = vld [vmem:[#allocation2 + $0x360] ss:$16 sps:$4 sm:$0xff]  }
  0xa6   :  { %v1974_v23 = vld [vmem:[#allocation2 + $0x368] ss:$16 sps:$4 sm:$0xff]   ;;  %v1979_v24 = vld [vmem:[#allocation2 + $0x384] ss:$16 sps:$4 sm:$0xff]   ;;  %v1982_v25 = vld [vmem:[#allocation2 + $0x38c] ss:$16 sps:$4 sm:$0xff]  }
  0xa7   :  { %1091 = vmatprep.mubr.bf16.mxu0 %v266_v35  ;;  %1173 = vmatprep.mubr.bf16.mxu1 %v266_v35  ;;  %v1977_v26 = vld [vmem:[#allocation2 + $0x380] ss:$16 sps:$4 sm:$0xff]   ;;  %v1980_v27 = vld [vmem:[#allocation2 + $0x388] ss:$16 sps:$4 sm:$0xff]   ;;  %v1985_v29 = vld [vmem:[#allocation2 + $0x3a4] ss:$16 sps:$4 sm:$0xff]  }
  0xa8   :  { %1092 = vmatmul.mubr.bf16.vlgmr.msra.gmra.mrb[0].mxu0 %v265_v38  ;;  %1174 = vmatmul.mubr.bf16.vlgmr.msra.gmra.mrb[0].mxu1 %v265_v38  ;;  %v1988_v30 = vld [vmem:[#allocation2 + $0x3ac] ss:$16 sps:$4 sm:$0xff]   ;;  %v1983_v31 = vld [vmem:[#allocation2 + $0x3a0] ss:$16 sps:$4 sm:$0xff]   ;;  %v1986_v32 = vld [vmem:[#allocation2 + $0x3a8] ss:$16 sps:$4 sm:$0xff]  }
  0xa9   :  { %1101 = vmatpush1.bf16.msra.mxu0 %v1905_v36  ;;  %1183 = vmatpush1.bf16.msra.mxu1 %v1908_v37  ;;  %v1991_v33 = vld [vmem:[#allocation2 + $0x3c4] ss:$16 sps:$4 sm:$0xff]   ;;  %v1994_v34 = vld [vmem:[#allocation2 + $0x3cc] ss:$16 sps:$4 sm:$0xff]   ;;  %v1989_v35 = vld [vmem:[#allocation2 + $0x3c0] ss:$16 sps:$4 sm:$0xff]  }
  0xaa   :  { %1132 = vmatprep.mubr.bf16.mxu0 %v268_v41  ;;  %1214 = vmatprep.mubr.bf16.mxu1 %v268_v41  ;;  %v1992_v36 = vld [vmem:[#allocation2 + $0x3c8] ss:$16 sps:$4 sm:$0xff]   ;;  %v1997_v37 = vld [vmem:[#allocation2 + $0x3e4] ss:$16 sps:$4 sm:$0xff]   ;;  %v2000_v38 = vld [vmem:[#allocation2 + $0x3ec] ss:$16 sps:$4 sm:$0xff]  }
  0xab   :  { %1102 = vmatprep.subr.bf16.mxu0 %v1913_v39  ;;  %1184 = vmatprep.subr.bf16.mxu1 %v1916_v40  ;;  %v1995_v39 = vld [vmem:[#allocation2 + $0x3e0] ss:$16 sps:$4 sm:$0xff]   ;;  %v1998_v40 = vld [vmem:[#allocation2 + $0x3e8] ss:$16 sps:$4 sm:$0xff]   ;;  %v263_v41 = vmax.f32 %v2164_v28, 0.0 }
  0xac   :  { %v2005_v28 = vld [vmem:[%s2281_s5 + $0x48] sm:$0xff]  }
  0xad   :  { %1103 = vmatpush1.bf16.msra.mxu0 %v1911_v42  ;;  %1185 = vmatpush1.bf16.msra.mxu1 %v1914_v43  ;;  %v2001_v42 = vld [vmem:[%s2281_s5 + $0x40] sm:$0xff]  }
  0xae   :  { %1104 = vmatprep.subr.bf16.mxu0 %v1919_v44  ;;  %1186 = vmatprep.subr.bf16.mxu1 %v1922_v45  ;;  %v2002_v43 = vld [vmem:[%s2281_s5 + $0xc0] sm:$0xff]  }
  0xaf   :  { %v2003_v44 = vld [vmem:[%s2281_s5] sm:$0xff]  }
  0xb0   :  { %v2004_v45 = vld [vmem:[%s2281_s5 + $0x80] sm:$0xff]  }
  0xb1   :  { %1105 = vmatpush1.bf16.msra.mxu0 %v1917_v46  ;;  %1187 = vmatpush1.bf16.msra.mxu1 %v1920_v47  ;;  %v267_v46 = vpack.c.bf16 %v263_v41, %v263_v41  ;;  %v2006_v47 = vld [vmem:[%s2281_s5 + $0xc8] sm:$0xff]  }
  0xb2   :  { %1106 = vmatprep.subr.bf16.mxu0 %v1925_v48  ;;  %1188 = vmatprep.subr.bf16.mxu1 %v1928_v49  ;;  %v2007_v48 = vld [vmem:[%s2281_s5 + $0x8] sm:$0xff]  }
  0xb3   :  { %v2008_v49 = vld [vmem:[%s2281_s5 + $0x88] sm:$0xff]  }
  0xb5   :  { %1107 = vmatpush1.bf16.msra.mxu0 %v1923_v50  ;;  %1189 = vmatpush1.bf16.msra.mxu1 %v1926_v51  ;;  %v2009_v50 = vld [vmem:[%s2281_s5 + $0x50] sm:$0xff]  }
  0xb6   :  { %1108 = vmatprep.subr.bf16.mxu0 %v1931_v52  ;;  %1190 = vmatprep.subr.bf16.mxu1 %v1934_v53  ;;  %v2010_v51 = vld [vmem:[%s2281_s5 + $0xd0] sm:$0xff]  }
  0xb7   :  { %v2011_v52 = vld [vmem:[%s2281_s5 + $0x10] sm:$0xff]  }
  0xb8   :  { %v2012_v53 = vld [vmem:[%s2281_s5 + $0x90] sm:$0xff]  }
  0xb9   :  { %1109 = vmatpush1.bf16.msra.mxu0 %v1929_v54  ;;  %1191 = vmatpush1.bf16.msra.mxu1 %v1932_v55  ;;  %v2013_v54 = vld [vmem:[%s2281_s5 + $0x58] sm:$0xff]  }
  0xba   :  { %1110 = vmatprep.subr.bf16.mxu0 %v1937_v56  ;;  %1192 = vmatprep.subr.bf16.mxu1 %v1940_v57  ;;  %v2014_v55 = vld [vmem:[%s2281_s5 + $0xd8] sm:$0xff]  }
  0xbb   :  { %v2015_v56 = vld [vmem:[%s2281_s5 + $0x18] sm:$0xff]  }
  0xbc   :  { %v2016_v57 = vld [vmem:[%s2281_s5 + $0x98] sm:$0xff]  }
  0xbd   :  { %1111 = vmatpush1.bf16.msra.mxu0 %v1935_v58  ;;  %1193 = vmatpush1.bf16.msra.mxu1 %v1938_v59  ;;  %v2017_v58 = vld [vmem:[%s2281_s5 + $0x60] sm:$0xff]  }
  0xbe   :  { %1112 = vmatprep.subr.bf16.mxu0 %v1943_v60  ;;  %1194 = vmatprep.subr.bf16.mxu1 %v1946_v61  ;;  %v2018_v59 = vld [vmem:[%s2281_s5 + $0xe0] sm:$0xff]  }
  0xbf   :  { %v2019_v60 = vld [vmem:[%s2281_s5 + $0x20] sm:$0xff]  }
  0xc0   :  { %v2020_v61 = vld [vmem:[%s2281_s5 + $0xa0] sm:$0xff]  }
  0xc1   :  { %1113 = vmatpush1.bf16.msra.mxu0 %v1941_v62  ;;  %1195 = vmatpush1.bf16.msra.mxu1 %v1944_v63  ;;  %v2021_v62 = vld [vmem:[%s2281_s5 + $0x68] sm:$0xff]  }
  0xc2   :  { %1114 = vmatprep.subr.bf16.mxu0 %v1949_v0  ;;  %1196 = vmatprep.subr.bf16.mxu1 %v1952_v1  ;;  %v2022_v63 = vld [vmem:[%s2281_s5 + $0xe8] sm:$0xff]  }
  0xc3   :  { %v2023_v0 = vld [vmem:[%s2281_s5 + $0x28] sm:$0xff]  }
  0xc4   :  { %v2024_v1 = vld [vmem:[%s2281_s5 + $0xa8] sm:$0xff]  }
  0xc5   :  { %1115 = vmatpush1.bf16.msra.mxu0 %v1947_v2  ;;  %1197 = vmatpush1.bf16.msra.mxu1 %v1950_v3  ;;  %v2025_v2 = vld [vmem:[%s2281_s5 + $0x70] sm:$0xff]  }
  0xc6   :  { %1116 = vmatprep.subr.bf16.mxu0 %v1955_v4  ;;  %1198 = vmatprep.subr.bf16.mxu1 %v1958_v5  ;;  %v2026_v3 = vld [vmem:[%s2281_s5 + $0xf0] sm:$0xff]  }
  0xc7   :  { %v2027_v4 = vld [vmem:[%s2281_s5 + $0x30] sm:$0xff]  }
  0xc8   :  { %v2028_v5 = vld [vmem:[%s2281_s5 + $0xb0] sm:$0xff]  }
  0xc9   :  { %1117 = vmatpush1.bf16.msra.mxu0 %v1953_v6  ;;  %1199 = vmatpush1.bf16.msra.mxu1 %v1956_v7  ;;  %v2029_v6 = vld [vmem:[%s2281_s5 + $0x78] sm:$0xff]  }
  0xca   :  { %1118 = vmatprep.subr.bf16.mxu0 %v1961_v8  ;;  %1200 = vmatprep.subr.bf16.mxu1 %v1964_v11  ;;  %v2030_v7 = vld [vmem:[%s2281_s5 + $0xf8] sm:$0xff]  }
  0xcb   :  { %v2031_v8 = vld [vmem:[%s2281_s5 + $0x38] sm:$0xff]  }
  0xcc   :  { %v2032_v11 = vld [vmem:[%s2281_s5 + $0xb8] sm:$0xff]  }
  0xcd   :  { %1119 = vmatpush1.bf16.msra.mxu0 %v1959_v12  ;;  %1201 = vmatpush1.bf16.msra.mxu1 %v1962_v13  ;;  %v397_v12 = vld [vmem:[%s2280_s4] sm:$0xf] }
  0xce   :  { %1120 = vmatprep.subr.bf16.mxu0 %v1967_v14  ;;  %1202 = vmatprep.subr.bf16.mxu1 %v1970_v16  ;;  %v402_v13 = vrot.slane %v397_v12, %v2121_v10  ;;  %v410_v14 = vrot.slane %v397_v12, %v2119_v9  ;;  %v406_v16 = vrot.slane %v397_v12, %v2129_v15 }
  0xd1   :  { %1121 = vmatpush1.bf16.msra.mxu0 %v1965_v17  ;;  %1203 = vmatpush1.bf16.msra.mxu1 %v1968_v19  ;;  %v414_v17 = vrot.slane %v397_v12, %v2132_v18 }
  0xd2   :  { %1122 = vmatprep.subr.bf16.mxu0 %v1973_v20  ;;  %1204 = vmatprep.subr.bf16.mxu1 %v1976_v21 }
  0xd5   :  { %1123 = vmatpush1.bf16.msra.mxu0 %v1971_v22  ;;  %1205 = vmatpush1.bf16.msra.mxu1 %v1974_v23 }
  0xd6   :  { %1124 = vmatprep.subr.bf16.mxu0 %v1979_v24  ;;  %1206 = vmatprep.subr.bf16.mxu1 %v1982_v25 }
  0xd9   :  { %1125 = vmatpush1.bf16.msra.mxu0 %v1977_v26  ;;  %1207 = vmatpush1.bf16.msra.mxu1 %v1980_v27 }
  0xda   :  { %1126 = vmatprep.subr.bf16.mxu0 %v1985_v29  ;;  %1208 = vmatprep.subr.bf16.mxu1 %v1988_v30 }
  0xdd   :  { %1127 = vmatpush1.bf16.msra.mxu0 %v1983_v31  ;;  %1209 = vmatpush1.bf16.msra.mxu1 %v1986_v32 }
  0xde   :  { %1128 = vmatprep.subr.bf16.mxu0 %v1991_v33  ;;  %1210 = vmatprep.subr.bf16.mxu1 %v1994_v34 }
  0xe1   :  { %1129 = vmatpush1.bf16.msra.mxu0 %v1989_v35  ;;  %1211 = vmatpush1.bf16.msra.mxu1 %v1992_v36 }
  0xe2   :  { %1130 = vmatprep.subr.bf16.mxu0 %v1997_v37  ;;  %1212 = vmatprep.subr.bf16.mxu1 %v2000_v38  ;;  %v1708_v38 = vld [vmem:[%s2282_s6] ss:$0 sm:$0xff] }
  0xe5   :  { %1131 = vmatpush1.bf16.msra.mxu0 %v1995_v39  ;;  %1213 = vmatpush1.bf16.msra.mxu1 %v1998_v40 }
  0xe6   :  { %1741 = vmatprep.subr.bf16.mxu0 %v2001_v42  ;;  %1763 = vmatprep.subr.bf16.mxu1 %v2002_v43 }
  0xe8   :  { %1133 = vmatmul.mubr.bf16.vlgmr.msra.gmra.mrb[0].mxu0 %v267_v46  ;;  %1215 = vmatmul.mubr.bf16.vlgmr.msra.gmra.mrb[0].mxu1 %v267_v46 }
  0xe9   :  { %1742 = vmatpush3.bf16.msra.mxu0 %v2003_v44  ;;  %1764 = vmatpush3.bf16.msra.mxu1 %v2004_v45 }
  0xea   :  { %1743 = vmatprep.subr.bf16.mxu0 %v2005_v28  ;;  %1765 = vmatprep.subr.bf16.mxu1 %v2006_v47 }
  0xed   :  { %1744 = vmatpush3.bf16.msra.mxu0 %v2007_v48  ;;  %1766 = vmatpush3.bf16.msra.mxu1 %v2008_v49 }
  0xee   :  { %1745 = vmatprep.subr.bf16.mxu0 %v2009_v50  ;;  %1767 = vmatprep.subr.bf16.mxu1 %v2010_v51 }
  0xf1   :  { %1746 = vmatpush3.bf16.msra.mxu0 %v2011_v52  ;;  %1768 = vmatpush3.bf16.msra.mxu1 %v2012_v53 }
  0xf2   :  { %1747 = vmatprep.subr.bf16.mxu0 %v2013_v54  ;;  %1769 = vmatprep.subr.bf16.mxu1 %v2014_v55 }
  0xf5   :  { %1748 = vmatpush3.bf16.msra.mxu0 %v2015_v56  ;;  %1770 = vmatpush3.bf16.msra.mxu1 %v2016_v57 }
  0xf6   :  { %1749 = vmatprep.subr.bf16.mxu0 %v2017_v58  ;;  %1771 = vmatprep.subr.bf16.mxu1 %v2018_v59 }
  0xf9   :  { %1750 = vmatpush3.bf16.msra.mxu0 %v2019_v60  ;;  %1772 = vmatpush3.bf16.msra.mxu1 %v2020_v61 }
  0xfa   :  { %1751 = vmatprep.subr.bf16.mxu0 %v2021_v62  ;;  %1773 = vmatprep.subr.bf16.mxu1 %v2022_v63 }
  0xfd   :  { %1752 = vmatpush3.bf16.msra.mxu0 %v2023_v0  ;;  %1774 = vmatpush3.bf16.msra.mxu1 %v2024_v1 }
  0xfe   :  { %1753 = vmatprep.subr.bf16.mxu0 %v2025_v2  ;;  %1775 = vmatprep.subr.bf16.mxu1 %v2026_v3 }
 0x101   :  { %1754 = vmatpush3.bf16.msra.mxu0 %v2027_v4  ;;  %1776 = vmatpush3.bf16.msra.mxu1 %v2028_v5 }
 0x102   :  { %1755 = vmatprep.subr.bf16.mxu0 %v2029_v6  ;;  %1777 = vmatprep.subr.bf16.mxu1 %v2030_v7 }
 0x105   :  { %1756 = vmatpush3.bf16.msra.mxu0 %v2031_v8  ;;  %1778 = vmatpush3.bf16.msra.mxu1 %v2032_v11 }
 0x1bb   :  { %v1134_v19 = vpop.f32.mrb[0].mxu0  ;;  %v1216_v20 = vpop.f32.mrb[0].mxu1 }
 0x1bc   :  { %v1785_v21 = vadd.f32 %v1134_v19, %v402_v13  ;;  %v1787_v22 = vadd.f32 %v1216_v20, %v410_v14  ;;  %v1136_v23 = vpop.f32.mrb[1].mxu0  ;;  %v1218_v24 = vpop.f32.mrb[1].mxu1 }
 0x1bd   :  { %v1786_v25 = vadd.f32 %v1136_v23, %v406_v16  ;;  %v1788_v26 = vadd.f32 %v1218_v24, %v414_v17  ;;  %v1138_v27 = vpop.f32.mrb[2].mxu0  ;;  %v1220_v29 = vpop.f32.mrb[2].mxu1 }
 0x1be   :  { %v1223_v30 = vmax.f32 %v1785_v21, 0.0  ;;  %v1225_v31 = vmax.f32 %v1787_v22, 0.0  ;;  %v1139_v32 = vpop.f32.mrb[3].mxu0  ;;  %v1221_v10 = vpop.f32.mrb[3].mxu1 }
 0x1bf   :  { %v1224_v33 = vmax.f32 %v1786_v25, 0.0  ;;  %v1226_v9 = vmax.f32 %v1788_v26, 0.0 }
 0x1c0   :  { %v1227_v35 = vpack.c.bf16 %v1223_v30, %v1223_v30  ;;  %v1229_v18 = vpack.c.bf16 %v1225_v31, %v1225_v31 }
 0x1c1   :  { %v1228_v34 = vpack.c.bf16 %v1224_v33, %v1224_v33  ;;  %v1230_v15 = vpack.c.bf16 %v1226_v9, %v1226_v9 }
 0x1c3   :  { %1526 = vmatprep.mubr.bf16.mxu0 %v1228_v34  ;;  %1566 = vmatprep.mubr.bf16.mxu1 %v1230_v15 }
 0x1c4   :  { %1527 = vmatmul.mubr.bf16.vlgmr.msra.gmra.mrb[4].mxu0 %v1227_v35  ;;  %1567 = vmatmul.mubr.bf16.vlgmr.msra.gmra.mrb[4].mxu1 %v1229_v18 }
 0x297   :  { %v1757_v36 = vpop.f32.mrb[4].mxu0  ;;  %v1779_v37 = vpop.f32.mrb[4].mxu1 }
 0x298   :  { %v1758_v39 = vpop.f32.mrb[5].mxu0  ;;  %v1780_v40 = vpop.f32.mrb[5].mxu1 }
 0x299   :  { %v1759_v41 = vadd.f32 %v1758_v39, %v1757_v36  ;;  %v1781_v42 = vadd.f32 %v1780_v40, %v1779_v37  ;;  %v1760_v43 = vpop.f32.mrb[6].mxu0  ;;  %v1782_v44 = vpop.f32.mrb[6].mxu1 }
 0x29a   :  { %v1761_v45 = vpop.f32.mrb[7].mxu0  ;;  %v1783_v46 = vpop.f32.mrb[7].mxu1 }
 0x29b   :  { %v1529_v28 = vadd.f32 %v1759_v41, %v1708_v38 }
 0x29d   :  { %v1569_v47 = vadd.f32 %v1781_v42, %v1529_v28 }
 0x29f   :  { %1574 = vst [vmem:[%s2283_s7] sm:$0xff] %v1569_v47 }
 0x2a0   :  { %1579 = vsyncpa [#allocation3], 1 }

</bundles_post_ra>
